<compile_context>
chip_gen: v5e
topology: v5e:2x2
jax: 0.10.0
libtpu: 0.0.40
codegen_flags: <defaults>
</compile_context>

<pallas_src>
import math

import jax
import jax.numpy as jnp
from jax import lax
from jax.experimental import pallas as pl
from jax.experimental.pallas import tpu as pltpu


def _encoder_kernel(rhs_ref, w_ref, out_ref):
    # rhs_ref : (1, C*L, tk)  im2col'd waveform (contraction on sublanes,
    #                         frames lane-dense)
    # w_ref   : (N, C*L)      packed conv filters
    # out_ref : (1, N, tk)    output tile in the PyTorch [M, N, K] layout
    acc = lax.dot_general(
        w_ref[...], rhs_ref[0],
        dimension_numbers=(((1,), (0,)), ((), ())),
        preferred_element_type=jnp.float32)
    # Fused epilogue: ReLU + cast, stored directly in [N, K] orientation.
    out_ref[0] = jnp.maximum(acc, 0.0).astype(out_ref.dtype)


def _pick_frame_tile(K, N, CL, M, itemsize=4, budget=24 << 20):
    """Largest lane-dense frame tile whose double-buffered blocks fit VMEM."""
    if K < 128:
        return K                       # tiny K: one full-extent block
    for tk in (2048, 1024, 512, 256, 128):
        if 2 * (CL + N) * tk * itemsize > budget:
            continue                   # keep double-buffered in/out in budget
        if M == 1 and tk > 128 and tk >= K:
            continue                   # batch==1: keep >=2 frame tiles (v7x megacore)
        return tk
    return 128


def encoder_forward(mixture, weight):
    """mixture: [M, C, T] waveform; weight: [N, C, L] torch Conv1d weight."""
    M, C, T = mixture.shape
    N, Cw, L = weight.shape
    assert C == Cw, "channel mismatch"
    assert L % 2 == 0, "stride = L // 2 path requires even kernel length L"
    Lh = L // 2
    K = (T - L) // Lh + 1
    assert K >= 1, "input shorter than one frame"
    T_used = (K + 1) * Lh              # conv1d drops trailing samples
    CL = C * L

    # im2col on the (small) input: [M, C, T] -> [M, C*L, K], frames lane-dense.
    sub = mixture[:, :, :T_used].reshape(M, C, K + 1, Lh)            # free view
    frames = jnp.concatenate([sub[:, :, :K, :], sub[:, :, 1:, :]], axis=-1)
    rhs = jnp.transpose(frames, (0, 1, 3, 2)).reshape(M, CL, K)      # [M, C*L, K]

    # Packed filters: W[n, c, l] -> Wp[n, c*L + l] (matches rhs ordering).
    w_packed = weight.reshape(N, CL)
    # TODO(synk): optional bf16 operand cast (keep f32 accumulation) for extra
    # MXU rate on v6e/v7x; kept f32 here to match the PyTorch numerics exactly.

    tk = _pick_frame_tile(K, N, CL, M)
    n_kb = -(-K // tk)                 # cdiv
    Kp = n_kb * tk
    if Kp != K:
        # Zero-pad the (tiny) rhs so every input block is fully in bounds; the
        # partial tail *output* block is masked by Pallas on write-back.
        rhs = jnp.pad(rhs, ((0, 0), (0, 0), (0, Kp - K)))

    block_bytes = (CL + N) * tk * 4
    vmem_limit = int(min(64 << 20, max(16 << 20, 2 * block_bytes + (4 << 20))))

    return pl.pallas_call(
        _encoder_kernel,
        out_shape=jax.ShapeDtypeStruct((M, N, K), mixture.dtype),
        grid_spec=pltpu.PrefetchScalarGridSpec(
            num_scalar_prefetch=0,
            grid=(M, n_kb),
            in_specs=[
                pl.BlockSpec((1, CL, tk), lambda m, kb: (m, 0, kb)),
                pl.BlockSpec((N, CL), lambda m, kb: (0, 0)),
            ],
            out_specs=pl.BlockSpec((1, N, tk), lambda m, kb: (m, 0, kb)),
        ),
        compiler_params=pltpu.CompilerParams(
            # No reduction axis: both grid dims are independent, so they can
            # shard across the two TensorCores on v7x (harmless on v5e/v6e).
            dimension_semantics=("parallel", "parallel"),
            vmem_limit_bytes=vmem_limit),
    )(rhs, w_packed)


def encoder_reference(mixture, weight, L):
    """Pure-JAX reference matching the PyTorch forward."""
    out = lax.conv_general_dilated(
        mixture, weight, window_strides=(L // 2,), padding="VALID",
        dimension_numbers=("NCH", "OIH", "NCH"))
    return jnp.maximum(out, 0.0)


if __name__ == "__main__":
    key = jax.random.PRNGKey(0)

    def make_case(case_key, M, C, N, L, K, extra_t=0):
        Lh = L // 2
        T = (K - 1) * Lh + L + extra_t         # extra_t samples get dropped
        k1, k2 = jax.random.split(case_key)
        mixture = jax.random.normal(k1, (M, C, T), dtype=jnp.float32)
        # Deterministic init of nn.Conv1d(C, N, L, bias=False): U(-b, b).
        bound = 1.0 / math.sqrt(C * L)
        weight = jax.random.uniform(k2, (N, C, L), dtype=jnp.float32,
                                    minval=-bound, maxval=bound)
        return mixture, weight

    k1, k2 = jax.random.split(key)
    cases = (
        # Small case: Encoder(L=16, N=128, num_channels=2), stereo T=72 -> K=8.
        (k1, dict(M=2, C=2, N=128, L=16, K=8, extra_t=0)),
        # Non-divisible-K case (K=200, batch=1): exercises the padded-rhs /
        # masked-tail-tile path and the batch==1 tile split.
        (k2, dict(M=1, C=2, N=128, L=16, K=200, extra_t=3)),
    )
    for case_key, cfg in cases:
        mixture, weight = make_case(case_key, **cfg)
        out = jax.block_until_ready(encoder_forward(mixture, weight))
        ref = encoder_reference(mixture, weight, cfg["L"])
        assert out.shape == ref.shape == (cfg["M"], cfg["N"], cfg["K"]), (
            out.shape, ref.shape)
        assert jnp.allclose(out, ref, atol=1e-5, rtol=1e-5), "mismatch vs reference"

    print("KERNEL_OK")
</pallas_src>

<mosaic_0001>
module attributes {stable_mosaic.version = 11 : i64} {
  func.func @_encoder_kernel(%arg0: i32, %arg1: i32, %arg2: memref<1x32x8xf32, #tpu.memory_space<vmem>>, %arg3: memref<128x32xf32, #tpu.memory_space<vmem>>, %arg4: memref<1x128x8xf32, #tpu.memory_space<vmem>>) attributes {dimension_semantics = [#tpu.dimension_semantics<parallel>, #tpu.dimension_semantics<parallel>], iteration_bounds = array<i64: 2, 1>, scalar_prefetch = 0 : i64, scratch_operands = 0 : i64, tpu.core_type = #tpu.core_type<tc>, window_params = [{transform_indices = @transform_0, window_bounds = array<i64: 1, 32, 8>}, {pipeline_mode = #tpu.pipeline_mode<synchronous>, transform_indices = @transform_1, window_bounds = array<i64: 128, 32>}, {transform_indices = @transform_2, window_bounds = array<i64: 1, 128, 8>}]} {
    %c0 = arith.constant 0 : index
    %c0_0 = arith.constant 0 : index
    %0 = vector.load %arg3[%c0, %c0_0] : memref<128x32xf32, #tpu.memory_space<vmem>>, vector<128x32xf32>
    %c0_1 = arith.constant 0 : index
    %c0_2 = arith.constant 0 : index
    %c0_3 = arith.constant 0 : index
    %1 = vector.load %arg2[%c0_1, %c0_2, %c0_3] : memref<1x32x8xf32, #tpu.memory_space<vmem>>, vector<1x32x8xf32>
    %2 = vector.shape_cast %1 : vector<1x32x8xf32> to vector<32x8xf32>
    %cst = arith.constant dense<0.000000e+00> : vector<128x8xf32>
    %3 = tpu.matmul %0, %2, %cst {dimension_numbers = #tpu.dot_dimension_numbers<[1], [0], [0], [1], [0, 0, 1, 1], [], []>} : vector<128x32xf32>, vector<32x8xf32>, vector<128x8xf32> -> vector<128x8xf32>
    %cst_4 = arith.constant 0.000000e+00 : f32
    %4 = vector.broadcast %cst_4 : f32 to vector<128x8xf32>
    %5 = arith.maximumf %3, %4 : vector<128x8xf32>
    %c0_5 = arith.constant 0 : index
    %c0_6 = arith.constant 0 : index
    %c0_7 = arith.constant 0 : index
    %6 = vector.load %arg4[%c0_5, %c0_6, %c0_7] : memref<1x128x8xf32, #tpu.memory_space<vmem>>, vector<1x128x8xf32>
    %7 = vector.shape_cast %6 : vector<1x128x8xf32> to vector<128x8xf32>
    %8 = vector.shape_cast %5 : vector<128x8xf32> to vector<1x128x8xf32>
    tpu.vector_store %arg4[%c0_5, %c0_6, %c0_7], %8 {strides = array<i32>} : memref<1x128x8xf32, #tpu.memory_space<vmem>>, vector<1x128x8xf32>,
    return
  }
  func.func @transform_0(%arg0: i32, %arg1: i32) -> (i32, i32, i32) {
    %c0_i32 = arith.constant 0 : i32
    %c0_i32_0 = arith.constant 0 : i32
    return %arg0, %c0_i32, %arg1 : i32, i32, i32
  }
  func.func @transform_1(%arg0: i32, %arg1: i32) -> (i32, i32) {
    %c0_i32 = arith.constant 0 : i32
    %c0_i32_0 = arith.constant 0 : i32
    %c0_i32_1 = arith.constant 0 : i32
    return %c0_i32, %c0_i32_0 : i32, i32
  }
  func.func @transform_2(%arg0: i32, %arg1: i32) -> (i32, i32, i32) {
    %c0_i32 = arith.constant 0 : i32
    %c0_i32_0 = arith.constant 0 : i32
    return %arg0, %c0_i32, %arg1 : i32, i32, i32
  }
}

</mosaic_0001>

<bundles_post_ra>
// kernel: tpu_custom_call.1
= control target key start
LH: loop header
LB: loop body
LE: loop exit
PB: predicated region body
PF: predicated region fallthrough
CT: control target
= control target key end

     0   :  { %s529_s9 = smov 0   ;;  %s531_s10 = smov 0   ;;  %s664_s0 = inlined_call_operand.vmem [shape: f32[2,32,8], index: 0, kind: input, shape index: {}]   ;;  %s665_s1 = inlined_call_operand.vmem [shape: f32[128,32], index: 1, kind: input, shape index: {}]   ;;  %s666_s2 = inlined_call_operand.vmem [shape: f32[2,128,8], index: 2, kind: output, shape index: {}]  }
   0x1   :  { %s533_s11 = smov 0  }
   0x2 LB: > { %s24_s12 = sadd.s32 1, %s508_s10  ;;  %p429_p0 = scmp.ge.s32.totalorder %s512_s11, 1  ;;  %s512_s11 = sphi %s533_s11, %s12_s11   ;;  %s508_s10 = sphi %s531_s10, %s668_s10   ;;  %s504_s9 = sphi %s529_s9, %s667_s9  }
   0x3   : > { %p26_p1 = scmp.ge.s32.totalorder %s24_s12, 2  ;;  %p131_p2 = scmp.lt.s32.totalorder %s512_s11, 3 }
   0x5   : > { %s670_s12 = smov (%p26_p1, %s24_s12), 0  ;;  %p132_p3 = pnand %p429_p0, %p131_p2 }
   0x6   : > { %p159_p4 = scmp.lt.s32.totalorder (!%p132_p3), %s504_s9, 1 }
   0x7   : > { %135 = sbr.rel (%p132_p3) target bundleno = 183 (0xb7), region = 28 }
   0xc   : > { %s672_s9 = smov (!%p159_p4, %s504_s9), 1  ;;  %v183_v4 = vld [vmem:[%s665_s1 + $0x40] sm:$0xff]  ;;  %vm195_vm0 = vcmask 261120   ;;  %v184_v8 = vld [vmem:[%s665_s1 + $0x48] sm:$0xff]  ;;  %v185_v12 = vld [vmem:[%s665_s1 + $0x50] sm:$0xff]  ;;  %vm325_vm1 = vcmask 64512  }
   0xd   : > { %s452_s13 = sshll.u32 %s672_s9, 5  ;;  %v187_v5 = vld [vmem:[%s665_s1 + $0x60] sm:$0xff]  ;;  %v188_v9 = vld [vmem:[%s665_s1 + $0x68] sm:$0xff]  ;;  %v189_v13 = vld [vmem:[%s665_s1 + $0x70] sm:$0xff]  ;;  %s453_s25 = sshll.u32 %s672_s9, 7 }
   0xe   : > { %s166_s16 = scalar_lea.vmem %s664_s0, %s452_s13  ;;  %v175_v6 = vld [vmem:[%s665_s1] sm:$0xff]  ;;  %v176_v10 = vld [vmem:[%s665_s1 + $0x8] sm:$0xff]  ;;  %v177_v14 = vld [vmem:[%s665_s1 + $0x10] sm:$0xff]  ;;  %s621_s28 = scalar_lea.vmem %s666_s2, %s453_s25 }
   0xf   : > { %v194_v0 = vld [vmem:[%s166_s16 + $0x18] sm:$0xff]  ;;  %v193_v1 = vld [vmem:[%s166_s16 + $0x10] sm:$0xff]  ;;  %v192_v2 = vld [vmem:[%s166_s16 + $0x8] sm:$0xff] }
  0x10   : > { %455 = vmatpush.msra.mxu2 %v194_v0  ;;  %456 = vmatpush.msra.mxu3 %v194_v0  ;;  %v191_v3 = vld [vmem:[%s166_s16] sm:$0xff]  ;;  %v180_v11 = vld [vmem:[%s665_s1 + $0x28] sm:$0xff]  ;;  %v181_v15 = vld [vmem:[%s665_s1 + $0x30] sm:$0xff] }
  0x11   : > { %256 = vmatpush.msra.mxu0 %v194_v0  ;;  %454 = vmatpush.msra.mxu1 %v194_v0  ;;  %v179_v7 = vld [vmem:[%s665_s1 + $0x20] sm:$0xff]  ;;  %v186_v16 = vld [vmem:[%s665_s1 + $0x58] sm:$0xff] }
  0x12   : > { %458 = vmatpush.msra.mxu2 %v193_v1  ;;  %459 = vmatpush.msra.mxu3 %v193_v1  ;;  %v190_v17 = vld [vmem:[%s665_s1 + $0x78] sm:$0xff] }
  0x13   : > { %257 = vmatpush.msra.mxu0 %v193_v1  ;;  %457 = vmatpush.msra.mxu1 %v193_v1  ;;  %v178_v18 = vld [vmem:[%s665_s1 + $0x18] sm:$0xff] }
  0x14   : > { %461 = vmatpush.msra.mxu2 %v192_v2  ;;  %462 = vmatpush.msra.mxu3 %v192_v2  ;;  %v182_v19 = vld [vmem:[%s665_s1 + $0x38] sm:$0xff] }
  0x15   : > { %258 = vmatpush.msra.mxu0 %v192_v2  ;;  %460 = vmatpush.msra.mxu1 %v192_v2 }
  0x16   : > { %464 = vmatpush.msra.mxu2 %v191_v3  ;;  %465 = vmatpush.msra.mxu3 %v191_v3 }
  0x17   : > { %442 = vmatmul.msk.f32.vlgmr.msra.gmra.mxu2 %vm195_vm0, %v183_v4  ;;  %446 = vmatmul.msk.f32.vlgmr.msra.gmra.mxu3 %vm195_vm0, %v187_v5 }
  0x18   : > { %259 = vmatpush.msra.mxu0 %v191_v3  ;;  %463 = vmatpush.msra.mxu1 %v191_v3 }
  0x19   : > { %434 = vmatmul.msk.f32.vlgmr.msra.gmra.mxu0 %vm195_vm0, %v175_v6  ;;  %438 = vmatmul.msk.f32.vlgmr.msra.gmra.mxu1 %vm195_vm0, %v179_v7 }
  0x1f   : > { %443 = vmatmul.msk.f32.gmra.mxu2 %vm195_vm0, %v184_v8  ;;  %447 = vmatmul.msk.f32.gmra.mxu3 %vm195_vm0, %v188_v9 }
  0x21   : > { %435 = vmatmul.msk.f32.gmra.mxu0 %vm195_vm0, %v176_v10  ;;  %439 = vmatmul.msk.f32.gmra.mxu1 %vm195_vm0, %v180_v11 }
  0x27   : > { %444 = vmatmul.msk.f32.gmra.mxu2 %vm195_vm0, %v185_v12  ;;  %448 = vmatmul.msk.f32.gmra.mxu3 %vm195_vm0, %v189_v13 }
  0x29   : > { %436 = vmatmul.msk.f32.gmra.mxu0 %vm195_vm0, %v177_v14  ;;  %440 = vmatmul.msk.f32.gmra.mxu1 %vm195_vm0, %v181_v15 }
  0x2f   : > { %445 = vmatmul.msk.f32.gmra.mxu2 %vm195_vm0, %v186_v16  ;;  %449 = vmatmul.msk.f32.gmra.mxu3 %vm195_vm0, %v190_v17 }
  0x31   : > { %437 = vmatmul.msk.f32.gmra.mxu0 %vm195_vm0, %v178_v18  ;;  %441 = vmatmul.msk.f32.gmra.mxu1 %vm195_vm0, %v182_v19 }
  0x96   : > { %v261_v20 = vpop.f32.mrf.mxu0  ;;  %v273_v21 = vpop.f32.mrf.mxu1 }
  0x97   : > { %v309_v22 = vmax.f32 %v261_v20, 0.0  ;;  %v313_v23 = vmax.f32 %v273_v21, 0.0 }
  0x99   : > { %326 = vst.msk [vmem:[%s621_s28] sm:$0xff] %vm325_vm1, %v309_v22 }
  0x9a   : > { %330 = vst.msk [vmem:[%s621_s28 + $0x20] sm:$0xff] %vm325_vm1, %v313_v23  ;;  %v285_v24 = vpop.f32.mrf.mxu2  ;;  %v297_v25 = vpop.f32.mrf.mxu3 }
  0x9b   : > { %v317_v26 = vmax.f32 %v285_v24, 0.0  ;;  %v321_v27 = vmax.f32 %v297_v25, 0.0 }
  0x9d   : > { %334 = vst.msk [vmem:[%s621_s28 + $0x40] sm:$0xff] %vm325_vm1, %v317_v26 }
  0x9e   : > { %338 = vst.msk [vmem:[%s621_s28 + $0x60] sm:$0xff] %vm325_vm1, %v321_v27  ;;  %v264_v28 = vpop.f32.mrf.mxu0  ;;  %v276_v29 = vpop.f32.mrf.mxu1 }
  0x9f   : > { %v310_v30 = vmax.f32 %v264_v28, 0.0  ;;  %v314_v31 = vmax.f32 %v276_v29, 0.0 }
  0xa1   : > { %327 = vst.msk [vmem:[%s621_s28 + $0x8] sm:$0xff] %vm325_vm1, %v310_v30 }
  0xa2   : > { %331 = vst.msk [vmem:[%s621_s28 + $0x28] sm:$0xff] %vm325_vm1, %v314_v31  ;;  %v288_v32 = vpop.f32.mrf.mxu2  ;;  %v300_v33 = vpop.f32.mrf.mxu3 }
  0xa3   : > { %v318_v34 = vmax.f32 %v288_v32, 0.0  ;;  %v322_v35 = vmax.f32 %v300_v33, 0.0 }
  0xa5   : > { %335 = vst.msk [vmem:[%s621_s28 + $0x48] sm:$0xff] %vm325_vm1, %v318_v34 }
  0xa6   : > { %339 = vst.msk [vmem:[%s621_s28 + $0x68] sm:$0xff] %vm325_vm1, %v322_v35  ;;  %v267_v36 = vpop.f32.mrf.mxu0  ;;  %v279_v37 = vpop.f32.mrf.mxu1 }
  0xa7   : > { %v311_v38 = vmax.f32 %v267_v36, 0.0  ;;  %v315_v39 = vmax.f32 %v279_v37, 0.0 }
  0xa9   : > { %328 = vst.msk [vmem:[%s621_s28 + $0x10] sm:$0xff] %vm325_vm1, %v311_v38 }
  0xaa   : > { %332 = vst.msk [vmem:[%s621_s28 + $0x30] sm:$0xff] %vm325_vm1, %v315_v39  ;;  %v291_v40 = vpop.f32.mrf.mxu2  ;;  %v303_v41 = vpop.f32.mrf.mxu3 }
  0xab   : > { %v319_v42 = vmax.f32 %v291_v40, 0.0  ;;  %v323_v43 = vmax.f32 %v303_v41, 0.0 }
  0xad   : > { %336 = vst.msk [vmem:[%s621_s28 + $0x50] sm:$0xff] %vm325_vm1, %v319_v42 }
  0xae   : > { %340 = vst.msk [vmem:[%s621_s28 + $0x70] sm:$0xff] %vm325_vm1, %v323_v43  ;;  %v270_v44 = vpop.f32.mrf.mxu0  ;;  %v282_v45 = vpop.f32.mrf.mxu1 }
  0xaf   : > { %v312_v46 = vmax.f32 %v270_v44, 0.0  ;;  %v316_v47 = vmax.f32 %v282_v45, 0.0 }
  0xb1   : > { %329 = vst.msk [vmem:[%s621_s28 + $0x18] sm:$0xff] %vm325_vm1, %v312_v46 }
  0xb2   : > { %333 = vst.msk [vmem:[%s621_s28 + $0x38] sm:$0xff] %vm325_vm1, %v316_v47  ;;  %v294_v48 = vpop.f32.mrf.mxu2  ;;  %v306_v49 = vpop.f32.mrf.mxu3 }
  0xb3   : > { %v320_v50 = vmax.f32 %v294_v48, 0.0  ;;  %v324_v51 = vmax.f32 %v306_v49, 0.0 }
  0xb5   : > { %337 = vst.msk [vmem:[%s621_s28 + $0x58] sm:$0xff] %vm325_vm1, %v320_v50 }
  0xb6   : > { %341 = vst.msk [vmem:[%s621_s28 + $0x78] sm:$0xff] %vm325_vm1, %v324_v51 }
  0xb7 PF: > { %s12_s11 = sadd.s32 1, %s512_s11   ;;  %s667_s9 = smov %s508_s10 }
  0xb8   : > { %p9_p5 = scmp.ge.s32.totalorder %s12_s11, 4   ;;  %s668_s10 = smov %s670_s12 }
  0xba   :  { %11 = sbr.rel (!%p9_p5) target bundleno = 2 (0x2), region = 58 }

</bundles_post_ra>
